<compile_context>
chip_gen: v5e
topology: v5e:2x2
jax: 0.10.0
libtpu: 0.0.40
codegen_flags: <defaults>
</compile_context>

<pallas_src>
import functools

import jax
import jax.numpy as jnp
from jax.experimental import pallas as pl
from jax.experimental.pallas import tpu as pltpu


# ---------------------------------------------------------------------------
# Constants (mirroring VICReg.__init__ / Projector)
# ---------------------------------------------------------------------------

EMBEDDING = 1000          # hardcoded in VICReg.__init__
MLP_SPEC = "32-32-32"     # args.mlp (small for this synthetic run)
ACTIVATION = "gelu"       # args.activation
NUM_FEATURES = int(MLP_SPEC.split("-")[-1])

# (8,128)-friendly padded sizes: lane-dense operands, MXU-friendly K.
EMB_PAD = 1024            # 1000 -> 1024 (zero-padded lanes / contraction rows)
HID_PAD = 128             # 32   -> 128  (zero-padded lanes)
CH_PAD = 128              # pooled-channel axis padded to one lane tile

_VMEM_SPEC = pl.BlockSpec(memory_space=pltpu.MemorySpace.VMEM)
_SQRT_HALF = 0.7071067811865476


# ---------------------------------------------------------------------------
# Fused kernel: backbone-stub matmul + full projector in one body
# ---------------------------------------------------------------------------

def _vicreg_fused_kernel(x_ref, w0_ref, b0_ref,
                         w1_ref, b1_ref, g1_ref, be1_ref,
                         w2_ref, b2_ref, g2_ref, be2_ref,
                         w3_ref, o_ref, *, n_real):
    """Pooled-linear backbone stub + (Linear+BN+GELU) x2 + Linear(no bias)."""
    n_pad = x_ref.shape[0]
    inv_n = jnp.float32(1.0 / n_real)

    # Row-validity mask: only the first n_real rows are real samples; the rest
    # are batch padding and must not contribute to BatchNorm statistics.
    row_ids = jax.lax.broadcasted_iota(jnp.int32, (n_pad, 1), 0)
    valid = (row_ids < n_real).astype(jnp.float32)               # (N_pad, 1)

    def bn_gelu(y, gamma, beta):
        # BatchNorm1d, training mode: biased variance over real rows, eps=1e-5.
        mean = jnp.sum(y * valid, axis=0, keepdims=True) * inv_n
        diff = (y - mean) * valid
        var = jnp.sum(diff * diff, axis=0, keepdims=True) * inv_n
        y_hat = (y - mean) * jax.lax.rsqrt(var + 1e-5)
        z = gamma * y_hat + beta
        # nn.GELU() default = exact (erf) form, kept for parity with PyTorch.
        # (A tanh-form GELU would move the transcendental to the EUP slot on
        # v5e, only relevant once batch tiles are 128+ rows.)
        return 0.5 * z * (1.0 + jax.lax.erf(z * jnp.float32(_SQRT_HALF)))

    # Backbone stand-in: input was already mean-pooled over HxW (f32) in the
    # wrapper, so this is a tiny (N_pad, C_pad) @ (C_pad, 1024) matmul.
    emb = jnp.dot(x_ref[...], w0_ref[...],
                  preferred_element_type=jnp.float32) + b0_ref[...]

    # Projector stage 1: Linear(1000,32) + BN + GELU   (padded 1024 -> 128).
    h1 = jnp.dot(emb.astype(jnp.bfloat16), w1_ref[...],
                 preferred_element_type=jnp.float32) + b1_ref[...]
    a1 = bn_gelu(h1, g1_ref[...], be1_ref[...])

    # Projector stage 2: Linear(32,32) + BN + GELU     (padded 128 -> 128).
    h2 = jnp.dot(a1.astype(jnp.bfloat16), w2_ref[...],
                 preferred_element_type=jnp.float32) + b2_ref[...]
    a2 = bn_gelu(h2, g2_ref[...], be2_ref[...])

    # Final Linear(32,32, bias=False).  Output kept lane-dense (128-wide slab);
    # the real columns are the first NUM_FEATURES, sliced in the wrapper.
    o_ref[...] = jnp.dot(a2.astype(jnp.bfloat16), w3_ref[...],
                         preferred_element_type=jnp.float32)


# ---------------------------------------------------------------------------
# Parameter construction (deterministic, synthetic)
# ---------------------------------------------------------------------------

def init_params(key, in_channels):
    f = [EMBEDDING] + list(map(int, MLP_SPEC.split("-")))
    keys = jax.random.split(key, 2 * len(f) + 2)
    params = {}

    # Backbone stand-in: Linear(C -> EMBEDDING) applied after global avg pool.
    params["bb_w"] = 0.05 * jax.random.normal(keys[0], (in_channels, EMBEDDING), jnp.float32)
    params["bb_b"] = 0.01 * jax.random.normal(keys[1], (1, EMBEDDING), jnp.float32)

    # Projector hidden layers: Linear + BN (+GELU).
    layers = []
    for i in range(len(f) - 2):
        kw, kb = keys[2 + 2 * i], keys[3 + 2 * i]
        layers.append({
            "w": (1.0 / jnp.sqrt(jnp.float32(f[i]))) *
                 jax.random.normal(kw, (f[i], f[i + 1]), jnp.float32),
            "b": 0.01 * jax.random.normal(kb, (1, f[i + 1]), jnp.float32),
            "gamma": jnp.ones((1, f[i + 1]), jnp.float32),
            "beta": jnp.zeros((1, f[i + 1]), jnp.float32),
        })
    params["hidden"] = layers

    # Final Linear, bias=False.
    params["final_w"] = (1.0 / jnp.sqrt(jnp.float32(f[-2]))) * \
        jax.random.normal(keys[-1], (f[-2], f[-1]), jnp.float32)
    return params


def _pad2d(a, rows, cols, fill=0.0):
    r, c = a.shape
    return jnp.pad(a, ((0, rows - r), (0, cols - c)), constant_values=fill)


def prepare_padded_params(params):
    """One-time setup: pad all weights to lane-dense shapes and cast matmul
    operands to bf16.  Hoisted out of the per-call forward so no padding /
    casting / HBM rematerialization happens on the hot path."""
    assert len(params["hidden"]) == 2, "fused kernel expects mlp spec '32-32-32'"
    l1, l2 = params["hidden"]
    in_channels = params["bb_w"].shape[0]
    assert in_channels <= CH_PAD

    padded = {
        # Backbone stand-in weight: (C, 1000) -> (128, 1024), zero rows/cols.
        "w0": _pad2d(params["bb_w"], CH_PAD, EMB_PAD).astype(jnp.bfloat16),
        "b0": _pad2d(params["bb_b"], 1, EMB_PAD),

        "w1": _pad2d(l1["w"], EMB_PAD, HID_PAD).astype(jnp.bfloat16),
        "b1": _pad2d(l1["b"], 1, HID_PAD),
        "g1": _pad2d(l1["gamma"], 1, HID_PAD, fill=1.0),
        "be1": _pad2d(l1["beta"], 1, HID_PAD),

        "w2": _pad2d(l2["w"], HID_PAD, HID_PAD).astype(jnp.bfloat16),
        "b2": _pad2d(l2["b"], 1, HID_PAD),
        "g2": _pad2d(l2["gamma"], 1, HID_PAD, fill=1.0),
        "be2": _pad2d(l2["beta"], 1, HID_PAD),

        "w3": _pad2d(params["final_w"], HID_PAD, HID_PAD).astype(jnp.bfloat16),
    }
    return jax.tree_util.tree_map(jnp.asarray, padded)


# ---------------------------------------------------------------------------
# Forward pass (single pallas_call)
# ---------------------------------------------------------------------------

@jax.jit
def vicreg_forward(padded_params, inp):
    n, c, h, w = inp.shape
    n_pad = max(8, ((n + 7) // 8) * 8)           # batch padded to f32 sublane

    # Backbone stand-in, stage 1: global average pool over HxW in f32 BEFORE
    # any matmul (keeps the kernel's contraction dim at C, not C*H*W, and
    # avoids the bf16 precision loss of a 1/HW-scaled folded weight).
    x_pooled = jnp.mean(inp.reshape(n, c, h * w), axis=-1)      # (N, C) f32
    x_in = jnp.pad(x_pooled, ((0, n_pad - n), (0, CH_PAD - c))).astype(jnp.bfloat16)

    p = padded_params
    out_pad = pl.pallas_call(
        functools.partial(_vicreg_fused_kernel, n_real=n),
        out_shape=jax.ShapeDtypeStruct((n_pad, HID_PAD), jnp.float32),
        in_specs=[_VMEM_SPEC] * 12,
        out_specs=_VMEM_SPEC,
    )(x_in, p["w0"], p["b0"],
      p["w1"], p["b1"], p["g1"], p["be1"],
      p["w2"], p["b2"], p["g2"], p["be2"],
      p["w3"])

    # Original forward returns the (undefined) name `output`; the projector
    # output is the only sensible interpretation.  Strip batch/lane padding.
    return out_pad[:n, :NUM_FEATURES]


if __name__ == "__main__":
    key = jax.random.PRNGKey(0)
    k_inp, k_par = jax.random.split(key)

    N, C, H, W = 2, 4, 16, 16            # NCHW, small synthetic shapes
    inp = jax.random.normal(k_inp, (N, C, H, W), jnp.float32)

    params = init_params(k_par, C)
    padded_params = prepare_padded_params(params)   # one-time, off the hot path

    out = vicreg_forward(padded_params, inp)
    jax.block_until_ready(out)

    assert out.shape == (N, NUM_FEATURES)
    assert out.dtype == jnp.float32
    assert bool(jnp.all(jnp.isfinite(out)))
    print("KERNEL_OK")
</pallas_src>

<mosaic_0001>
module attributes {stable_mosaic.version = 11 : i64} {
  func.func @_vicreg_fused_kernel(%arg0: memref<8x128xbf16, #tpu.memory_space<vmem>>, %arg1: memref<128x1024xbf16, #tpu.memory_space<vmem>>, %arg2: memref<1x1024xf32, #tpu.memory_space<vmem>>, %arg3: memref<1024x128xbf16, #tpu.memory_space<vmem>>, %arg4: memref<1x128xf32, #tpu.memory_space<vmem>>, %arg5: memref<1x128xf32, #tpu.memory_space<vmem>>, %arg6: memref<1x128xf32, #tpu.memory_space<vmem>>, %arg7: memref<128x128xbf16, #tpu.memory_space<vmem>>, %arg8: memref<1x128xf32, #tpu.memory_space<vmem>>, %arg9: memref<1x128xf32, #tpu.memory_space<vmem>>, %arg10: memref<1x128xf32, #tpu.memory_space<vmem>>, %arg11: memref<128x128xbf16, #tpu.memory_space<vmem>>, %arg12: memref<8x128xf32, #tpu.memory_space<vmem>>) attributes {dimension_semantics = [], scalar_prefetch = 0 : i64, scratch_operands = 0 : i64, tpu.core_type = #tpu.core_type<tc>} {
    %0 = tpu.iota {dimensions = array<i32: 0>} : vector<8x1xi32>
    %c2_i32 = arith.constant 2 : i32
    %1 = vector.broadcast %c2_i32 : i32 to vector<8x1xi32>
    %2 = arith.cmpi slt, %0, %1 : vector<8x1xi32>
    %3 = arith.extui %2 : vector<8x1xi1> to vector<8x1xi32>
    %4 = arith.sitofp %3 : vector<8x1xi32> to vector<8x1xf32>
    %c0 = arith.constant 0 : index
    %c0_0 = arith.constant 0 : index
    %5 = vector.load %arg0[%c0, %c0_0] : memref<8x128xbf16, #tpu.memory_space<vmem>>, vector<8x128xbf16>
    %c0_1 = arith.constant 0 : index
    %c0_2 = arith.constant 0 : index
    %6 = vector.load %arg1[%c0_1, %c0_2] : memref<128x1024xbf16, #tpu.memory_space<vmem>>, vector<128x1024xbf16>
    %cst = arith.constant dense<0.000000e+00> : vector<8x1024xf32>
    %7 = tpu.matmul %5, %6, %cst {dimension_numbers = #tpu.dot_dimension_numbers<[1], [0], [0], [1], [0, 0, 1, 1], [], []>} : vector<8x128xbf16>, vector<128x1024xbf16>, vector<8x1024xf32> -> vector<8x1024xf32>
    %c0_3 = arith.constant 0 : index
    %c0_4 = arith.constant 0 : index
    %8 = vector.load %arg2[%c0_3, %c0_4] : memref<1x1024xf32, #tpu.memory_space<vmem>>, vector<1x1024xf32>
    %9 = vector.broadcast %8 : vector<1x1024xf32> to vector<8x1024xf32>
    %10 = arith.addf %7, %9 : vector<8x1024xf32>
    %11 = arith.truncf %10 : vector<8x1024xf32> to vector<8x1024xbf16>
    %c0_5 = arith.constant 0 : index
    %c0_6 = arith.constant 0 : index
    %12 = vector.load %arg3[%c0_5, %c0_6] : memref<1024x128xbf16, #tpu.memory_space<vmem>>, vector<1024x128xbf16>
    %cst_7 = arith.constant dense<0.000000e+00> : vector<8x128xf32>
    %13 = tpu.matmul %11, %12, %cst_7 {dimension_numbers = #tpu.dot_dimension_numbers<[1], [0], [0], [1], [0, 0, 1, 1], [], []>} : vector<8x1024xbf16>, vector<1024x128xbf16>, vector<8x128xf32> -> vector<8x128xf32>
    %c0_8 = arith.constant 0 : index
    %c0_9 = arith.constant 0 : index
    %14 = vector.load %arg4[%c0_8, %c0_9] : memref<1x128xf32, #tpu.memory_space<vmem>>, vector<1x128xf32>
    %15 = vector.broadcast %14 : vector<1x128xf32> to vector<8x128xf32>
    %16 = arith.addf %13, %15 : vector<8x128xf32>
    %c0_10 = arith.constant 0 : index
    %c0_11 = arith.constant 0 : index
    %17 = vector.load %arg5[%c0_10, %c0_11] : memref<1x128xf32, #tpu.memory_space<vmem>>, vector<1x128xf32>
    %c0_12 = arith.constant 0 : index
    %c0_13 = arith.constant 0 : index
    %18 = vector.load %arg6[%c0_12, %c0_13] : memref<1x128xf32, #tpu.memory_space<vmem>>, vector<1x128xf32>
    %19 = vector.broadcast %4 : vector<8x1xf32> to vector<8x128xf32>
    %20 = arith.mulf %16, %19 : vector<8x128xf32>
    %cst_14 = arith.constant dense<0.000000e+00> : vector<128xf32>
    %21 = vector.multi_reduction <add>, %20, %cst_14 [0] : vector<8x128xf32> to vector<128xf32>
    %22 = vector.shape_cast %21 : vector<128xf32> to vector<1x128xf32>
    %cst_15 = arith.constant 5.000000e-01 : f32
    %23 = vector.broadcast %cst_15 : f32 to vector<1x128xf32>
    %24 = arith.mulf %22, %23 : vector<1x128xf32>
    %25 = vector.broadcast %24 : vector<1x128xf32> to vector<8x128xf32>
    %26 = arith.subf %16, %25 : vector<8x128xf32>
    %27 = vector.broadcast %4 : vector<8x1xf32> to vector<8x128xf32>
    %28 = arith.mulf %26, %27 : vector<8x128xf32>
    %29 = arith.mulf %28, %28 : vector<8x128xf32>
    %cst_16 = arith.constant dense<0.000000e+00> : vector<128xf32>
    %30 = vector.multi_reduction <add>, %29, %cst_16 [0] : vector<8x128xf32> to vector<128xf32>
    %31 = vector.shape_cast %30 : vector<128xf32> to vector<1x128xf32>
    %cst_17 = arith.constant 5.000000e-01 : f32
    %32 = vector.broadcast %cst_17 : f32 to vector<1x128xf32>
    %33 = arith.mulf %31, %32 : vector<1x128xf32>
    %34 = vector.broadcast %24 : vector<1x128xf32> to vector<8x128xf32>
    %35 = arith.subf %16, %34 : vector<8x128xf32>
    %cst_18 = arith.constant 9.99999974E-6 : f32
    %36 = vector.broadcast %cst_18 : f32 to vector<1x128xf32>
    %37 = arith.addf %33, %36 : vector<1x128xf32>
    %38 = math.rsqrt %37 : vector<1x128xf32>
    %39 = vector.broadcast %38 : vector<1x128xf32> to vector<8x128xf32>
    %40 = arith.mulf %35, %39 : vector<8x128xf32>
    %41 = vector.broadcast %17 : vector<1x128xf32> to vector<8x128xf32>
    %42 = arith.mulf %41, %40 : vector<8x128xf32>
    %43 = vector.broadcast %18 : vector<1x128xf32> to vector<8x128xf32>
    %44 = arith.addf %42, %43 : vector<8x128xf32>
    %cst_19 = arith.constant 5.000000e-01 : f32
    %45 = vector.broadcast %cst_19 : f32 to vector<8x128xf32>
    %46 = arith.mulf %45, %44 : vector<8x128xf32>
    %cst_20 = arith.constant 0.707106769 : f32
    %47 = vector.broadcast %cst_20 : f32 to vector<8x128xf32>
    %48 = arith.mulf %44, %47 : vector<8x128xf32>
    %49 = math.erf %48 : vector<8x128xf32>
    %cst_21 = arith.constant 1.000000e+00 : f32
    %50 = vector.broadcast %cst_21 : f32 to vector<8x128xf32>
    %51 = arith.addf %50, %49 : vector<8x128xf32>
    %52 = arith.mulf %46, %51 : vector<8x128xf32>
    %53 = arith.truncf %52 : vector<8x128xf32> to vector<8x128xbf16>
    %c0_22 = arith.constant 0 : index
    %c0_23 = arith.constant 0 : index
    %54 = vector.load %arg7[%c0_22, %c0_23] : memref<128x128xbf16, #tpu.memory_space<vmem>>, vector<128x128xbf16>
    %cst_24 = arith.constant dense<0.000000e+00> : vector<8x128xf32>
    %55 = tpu.matmul %53, %54, %cst_24 {dimension_numbers = #tpu.dot_dimension_numbers<[1], [0], [0], [1], [0, 0, 1, 1], [], []>} : vector<8x128xbf16>, vector<128x128xbf16>, vector<8x128xf32> -> vector<8x128xf32>
    %c0_25 = arith.constant 0 : index
    %c0_26 = arith.constant 0 : index
    %56 = vector.load %arg8[%c0_25, %c0_26] : memref<1x128xf32, #tpu.memory_space<vmem>>, vector<1x128xf32>
    %57 = vector.broadcast %56 : vector<1x128xf32> to vector<8x128xf32>
    %58 = arith.addf %55, %57 : vector<8x128xf32>
    %c0_27 = arith.constant 0 : index
    %c0_28 = arith.constant 0 : index
    %59 = vector.load %arg9[%c0_27, %c0_28] : memref<1x128xf32, #tpu.memory_space<vmem>>, vector<1x128xf32>
    %c0_29 = arith.constant 0 : index
    %c0_30 = arith.constant 0 : index
    %60 = vector.load %arg10[%c0_29, %c0_30] : memref<1x128xf32, #tpu.memory_space<vmem>>, vector<1x128xf32>
    %61 = vector.broadcast %4 : vector<8x1xf32> to vector<8x128xf32>
    %62 = arith.mulf %58, %61 : vector<8x128xf32>
    %cst_31 = arith.constant dense<0.000000e+00> : vector<128xf32>
    %63 = vector.multi_reduction <add>, %62, %cst_31 [0] : vector<8x128xf32> to vector<128xf32>
    %64 = vector.shape_cast %63 : vector<128xf32> to vector<1x128xf32>
    %cst_32 = arith.constant 5.000000e-01 : f32
    %65 = vector.broadcast %cst_32 : f32 to vector<1x128xf32>
    %66 = arith.mulf %64, %65 : vector<1x128xf32>
    %67 = vector.broadcast %66 : vector<1x128xf32> to vector<8x128xf32>
    %68 = arith.subf %58, %67 : vector<8x128xf32>
    %69 = vector.broadcast %4 : vector<8x1xf32> to vector<8x128xf32>
    %70 = arith.mulf %68, %69 : vector<8x128xf32>
    %71 = arith.mulf %70, %70 : vector<8x128xf32>
    %cst_33 = arith.constant dense<0.000000e+00> : vector<128xf32>
    %72 = vector.multi_reduction <add>, %71, %cst_33 [0] : vector<8x128xf32> to vector<128xf32>
    %73 = vector.shape_cast %72 : vector<128xf32> to vector<1x128xf32>
    %cst_34 = arith.constant 5.000000e-01 : f32
    %74 = vector.broadcast %cst_34 : f32 to vector<1x128xf32>
    %75 = arith.mulf %73, %74 : vector<1x128xf32>
    %76 = vector.broadcast %66 : vector<1x128xf32> to vector<8x128xf32>
    %77 = arith.subf %58, %76 : vector<8x128xf32>
    %cst_35 = arith.constant 9.99999974E-6 : f32
    %78 = vector.broadcast %cst_35 : f32 to vector<1x128xf32>
    %79 = arith.addf %75, %78 : vector<1x128xf32>
    %80 = math.rsqrt %79 : vector<1x128xf32>
    %81 = vector.broadcast %80 : vector<1x128xf32> to vector<8x128xf32>
    %82 = arith.mulf %77, %81 : vector<8x128xf32>
    %83 = vector.broadcast %59 : vector<1x128xf32> to vector<8x128xf32>
    %84 = arith.mulf %83, %82 : vector<8x128xf32>
    %85 = vector.broadcast %60 : vector<1x128xf32> to vector<8x128xf32>
    %86 = arith.addf %84, %85 : vector<8x128xf32>
    %cst_36 = arith.constant 5.000000e-01 : f32
    %87 = vector.broadcast %cst_36 : f32 to vector<8x128xf32>
    %88 = arith.mulf %87, %86 : vector<8x128xf32>
    %cst_37 = arith.constant 0.707106769 : f32
    %89 = vector.broadcast %cst_37 : f32 to vector<8x128xf32>
    %90 = arith.mulf %86, %89 : vector<8x128xf32>
    %91 = math.erf %90 : vector<8x128xf32>
    %cst_38 = arith.constant 1.000000e+00 : f32
    %92 = vector.broadcast %cst_38 : f32 to vector<8x128xf32>
    %93 = arith.addf %92, %91 : vector<8x128xf32>
    %94 = arith.mulf %88, %93 : vector<8x128xf32>
    %95 = arith.truncf %94 : vector<8x128xf32> to vector<8x128xbf16>
    %c0_39 = arith.constant 0 : index
    %c0_40 = arith.constant 0 : index
    %96 = vector.load %arg11[%c0_39, %c0_40] : memref<128x128xbf16, #tpu.memory_space<vmem>>, vector<128x128xbf16>
    %cst_41 = arith.constant dense<0.000000e+00> : vector<8x128xf32>
    %97 = tpu.matmul %95, %96, %cst_41 {dimension_numbers = #tpu.dot_dimension_numbers<[1], [0], [0], [1], [0, 0, 1, 1], [], []>} : vector<8x128xbf16>, vector<128x128xbf16>, vector<8x128xf32> -> vector<8x128xf32>
    %c0_42 = arith.constant 0 : index
    %c0_43 = arith.constant 0 : index
    %98 = vector.load %arg12[%c0_42, %c0_43] : memref<8x128xf32, #tpu.memory_space<vmem>>, vector<8x128xf32>
    tpu.vector_store %arg12[%c0_42, %c0_43], %97 {strides = array<i32>} : memref<8x128xf32, #tpu.memory_space<vmem>>, vector<8x128xf32>,
    return
  }
}

</mosaic_0001>

<bundles_post_ra>
// kernel: vicreg_forward.1
= control target key start
LH: loop header
LB: loop body
LE: loop exit
PB: predicated region body
PF: predicated region fallthrough
CT: control target
= control target key end

     0   :  { %17 = vsyncpa [#allocation3], 0  ;;  %s2513_s0 = inlined_call_operand.vmem [shape: bf16[8,128], index: 0, kind: input, shape index: {}]   ;;  %s2514_s1 = inlined_call_operand.hbm [shape: bf16[128,1024], index: 1, kind: input, shape index: {}]   ;;  %s2515_s2 = inlined_call_operand.vmem [shape: f32[1,1024], index: 2, kind: input, shape index: {}]   ;;  %s2516_s3 = inlined_call_operand.hbm [shape: bf16[1024,128], index: 3, kind: input, shape index: {}]   ;;  %s2517_s4 = inlined_call_operand.vmem [shape: f32[1,128], index: 4, kind: input, shape index: {}]   ;;  %s2518_s5 = inlined_call_operand.vmem [shape: f32[1,128], index: 5, kind: input, shape index: {}]   ;;  %s2519_s6 = inlined_call_operand.vmem [shape: f32[1,128], index: 6, kind: input, shape index: {}]   ;;  %s2520_s7 = inlined_call_operand.vmem [shape: bf16[128,128], index: 7, kind: input, shape index: {}]   ;;  %s2521_s8 = inlined_call_operand.vmem [shape: f32[1,128], index: 8, kind: input, shape index: {}]   ;;  %s2522_s9 = inlined_call_operand.vmem [shape: f32[1,128], index: 9, kind: input, shape index: {}]   ;;  %s2523_s10 = inlined_call_operand.vmem [shape: f32[1,128], index: 10, kind: input, shape index: {}]   ;;  %s2524_s11 = inlined_call_operand.vmem [shape: bf16[128,128], index: 11, kind: input, shape index: {}]   ;;  %s2525_s12 = inlined_call_operand.vmem [shape: f32[8,128], index: 12, kind: output, shape index: {}]  }
   0x1   :  { %s25_s23 = sshll.u32 %s2514_s1, 4  ;;  %s26_s23 = int_to_ptr.hbm [resolvable:$true] %s25_s23 }
   0x2   :  { %18 = vsyncpa [#allocation5], 0  ;;  %s2344_s24 = smov [#allocation2]   ;;  %s40_s28 = sshll.u32 %s2516_s3, 4  ;;  %s41_s28 = int_to_ptr.hbm [resolvable:$true] %s40_s28 }
   0x3   :  { %s27_s25 = sshll.u32 %s2344_s24, 4  ;;  %s2345_s29 = smov 512   ;;  %s28_s25 = int_to_ptr.vmem [resolvable:$true] %s27_s25 }
   0x4   :  { %s2346_s30 = smov 32   ;;  %s2347_s13 = smov [#allocation4]  }
   0x5   :  { %33 = dma.hbm_to_vmem [thread:$0]  %s26_s23, 8192, %s28_s25, [#allocation3], %s2345_s29, %s2345_s29, %s2346_s30  }
   0x6   :  { %s42_s14 = sshll.u32 %s2347_s13, 4  ;;  %s2348_s15 = smov 64   ;;  %s43_s14 = int_to_ptr.vmem [resolvable:$true] %s42_s14 }
   0x7   :  { %s2349_s16 = smov 4  }
   0x8   :  { %48 = dma.hbm_to_vmem [thread:$0]  %s41_s28, 8192, %s43_s14, [#allocation5], %s2348_s15, %s2348_s15, %s2349_s16  }
   0x9   :  { %2340 = dma.done.wait [#allocation3], 8192  }
   0xa   :  { %2341 = vsyncadd [#allocation3], 4294959104 }
   0xb   :  { %2342 = dma.done.wait [#allocation5], 8192  }
   0xc   :  { %2343 = vsyncadd [#allocation5], 4294959104  ;;  %v1775_v0 = vld [vmem:[#allocation2 + $0x1c0] sm:$0xf]  ;;  %v1783_v2 = vld [vmem:[#allocation2 + $0x1c8] sm:$0xf] }
   0xd   :  { %v2187_v1 = vld [vmem:[#allocation2 + $0x1dc] sm:$0xf0]  ;;  %v2188_v4 = vld [vmem:[#allocation2 + $0x1e4] sm:$0xf0]  ;;  %v2184_v5 = vld [vmem:[#allocation2 + $0x1cc] sm:$0xf] }
   0xe   :  { %v1776_v3 = vor.u32 %v2187_v1, %v1775_v0  ;;  %v1785_v6 = vld [vmem:[#allocation2 + $0x1e8] sm:$0xf0]  ;;  %v1784_v7 = vor.u32 %v2188_v4, %v1783_v2  ;;  %v2183_v9 = vld [vmem:[#allocation2 + $0x1c4] sm:$0xf]  ;;  %v1743_v11 = vld [vmem:[#allocation2 + $0x180] sm:$0xf] }
   0xf   :  { %v1788_v8 = vor.u32 %v2184_v5, %v1785_v6  ;;  %v1777_v10 = vld [vmem:[#allocation2 + $0x1e0] sm:$0xf0]  ;;  %v2179_v13 = vld [vmem:[#allocation2 + $0x19c] sm:$0xf0]  ;;  %v1751_v14 = vld [vmem:[#allocation2 + $0x188] sm:$0xf] }
  0x10   :  { %481 = vmatpush.bf16.msra.mxu0 %v1776_v3  ;;  %v1780_v12 = vor.u32 %v2183_v9, %v1777_v10  ;;  %v2180_v15 = vld [vmem:[#allocation2 + $0x1a4] sm:$0xf0]  ;;  %507 = vmatpush.bf16.msra.mxu2 %v1784_v7  ;;  %v1744_v16 = vor.u32 %v2179_v13, %v1743_v11  ;;  %v2176_v18 = vld [vmem:[#allocation2 + $0x18c] sm:$0xf]  ;;  %v2175_v20 = vld [vmem:[#allocation2 + $0x184] sm:$0xf] }
  0x11   :  { %520 = vmatpush.bf16.msra.mxu3 %v1788_v8  ;;  %v1752_v17 = vor.u32 %v2180_v15, %v1751_v14  ;;  %v1753_v19 = vld [vmem:[#allocation2 + $0x1a8] sm:$0xf0]  ;;  %v1745_v22 = vld [vmem:[#allocation2 + $0x1a0] sm:$0xf0]  ;;  %v1711_v23 = vld [vmem:[#allocation2 + $0x140] sm:$0xf] }
  0x12   :  { %494 = vmatpush.bf16.msra.mxu1 %v1780_v12  ;;  %v1756_v21 = vor.u32 %v2176_v18, %v1753_v19  ;;  %v2171_v24 = vld [vmem:[#allocation2 + $0x15c] sm:$0xf0]  ;;  %v1748_v25 = vor.u32 %v2175_v20, %v1745_v22  ;;  %v1719_v26 = vld [vmem:[#allocation2 + $0x148] sm:$0xf]  ;;  %v2168_v28 = vld [vmem:[#allocation2 + $0x14c] sm:$0xf] }
  0x13   :  { %v2172_v27 = vld [vmem:[#allocation2 + $0x164] sm:$0xf0]  ;;  %v1712_v29 = vor.u32 %v2171_v24, %v1711_v23  ;;  %v1721_v30 = vld [vmem:[#allocation2 + $0x168] sm:$0xf0]  ;;  %v2167_v31 = vld [vmem:[#allocation2 + $0x144] sm:$0xf] }
  0x14   :  { %482 = vmatpush.bf16.msra.mxu0 %v1744_v16  ;;  %v1713_v32 = vld [vmem:[#allocation2 + $0x160] sm:$0xf0]  ;;  %508 = vmatpush.bf16.msra.mxu2 %v1752_v17  ;;  %v1720_v33 = vor.u32 %v2172_v27, %v1719_v26  ;;  %v1724_v34 = vor.u32 %v2168_v28, %v1721_v30  ;;  %v1679_v35 = vld [vmem:[#allocation2 + $0x100] sm:$0xf]  ;;  %v1687_v37 = vld [vmem:[#allocation2 + $0x108] sm:$0xf] }
  0x15   :  { %521 = vmatpush.bf16.msra.mxu3 %v1756_v21  ;;  %v2163_v36 = vld [vmem:[#allocation2 + $0x11c] sm:$0xf0]  ;;  %v1716_v38 = vor.u32 %v2167_v31, %v1713_v32  ;;  %v2164_v39 = vld [vmem:[#allocation2 + $0x124] sm:$0xf0]  ;;  %v2160_v40 = vld [vmem:[#allocation2 + $0x10c] sm:$0xf] }
  0x16   :  { %495 = vmatpush.bf16.msra.mxu1 %v1748_v25  ;;  %v1689_v41 = vld [vmem:[#allocation2 + $0x128] sm:$0xf0]  ;;  %v2159_v42 = vld [vmem:[#allocation2 + $0x104] sm:$0xf]  ;;  %v1680_v44 = vor.u32 %v2163_v36, %v1679_v35  ;;  %v1688_v45 = vor.u32 %v2164_v39, %v1687_v37  ;;  %v1647_v47 = vld [vmem:[#allocation2 + $0xc0] sm:$0xf] }
  0x17   :  { %v1681_v43 = vld [vmem:[#allocation2 + $0x120] sm:$0xf0]  ;;  %v1692_v46 = vor.u32 %v2160_v40, %v1689_v41  ;;  %v2155_v48 = vld [vmem:[#allocation2 + $0xdc] sm:$0xf0]  ;;  %v1655_v49 = vld [vmem:[#allocation2 + $0xc8] sm:$0xf] }
  0x18   :  { %483 = vmatpush.bf16.msra.mxu0 %v1712_v29  ;;  %509 = vmatpush.bf16.msra.mxu2 %v1720_v33  ;;  %v1684_v50 = vor.u32 %v2159_v42, %v1681_v43  ;;  %v2156_v51 = vld [vmem:[#allocation2 + $0xe4] sm:$0xf0]  ;;  %v2152_v52 = vld [vmem:[#allocation2 + $0xcc] sm:$0xf]  ;;  %v2151_v54 = vld [vmem:[#allocation2 + $0xc4] sm:$0xf]  ;;  %v1648_v56 = vor.u32 %v2155_v48, %v1647_v47 }
  0x19   :  { %522 = vmatpush.bf16.msra.mxu3 %v1724_v34  ;;  %v1657_v53 = vld [vmem:[#allocation2 + $0xe8] sm:$0xf0]  ;;  %v1649_v55 = vld [vmem:[#allocation2 + $0xe0] sm:$0xf0]  ;;  %v1656_v57 = vor.u32 %v2156_v51, %v1655_v49  ;;  %v1615_v59 = vld [vmem:[#allocation2 + $0x80] sm:$0xf] }
  0x1a   :  { %496 = vmatpush.bf16.msra.mxu1 %v1716_v38  ;;  %v1660_v58 = vor.u32 %v2152_v52, %v1657_v53  ;;  %v2147_v60 = vld [vmem:[#allocation2 + $0x9c] sm:$0xf0]  ;;  %v1623_v61 = vld [vmem:[#allocation2 + $0x88] sm:$0xf]  ;;  %v1652_v62 = vor.u32 %v2151_v54, %v1649_v55  ;;  %v2144_v0 = vld [vmem:[#allocation2 + $0x8c] sm:$0xf] }
  0x1b   :  { %v2148_v63 = vld [vmem:[#allocation2 + $0xa4] sm:$0xf0]  ;;  %v1625_v1 = vld [vmem:[#allocation2 + $0xa8] sm:$0xf0]  ;;  %v2143_v2 = vld [vmem:[#allocation2 + $0x84] sm:$0xf]  ;;  %v1616_v4 = vor.u32 %v2147_v60, %v1615_v59 }
  0x1c   :  { %484 = vmatpush.bf16.msra.mxu0 %v1680_v44  ;;  %510 = vmatpush.bf16.msra.mxu2 %v1688_v45  ;;  %v1617_v3 = vld [vmem:[#allocation2 + $0xa0] sm:$0xf0]  ;;  %v1624_v5 = vor.u32 %v2148_v63, %v1623_v61  ;;  %v1628_v6 = vor.u32 %v2144_v0, %v1625_v1  ;;  %v1583_v7 = vld [vmem:[#allocation2 + $0x40] sm:$0xf]  ;;  %v1591_v9 = vld [vmem:[#allocation2 + $0x48] sm:$0xf] }
  0x1d   :  { %523 = vmatpush.bf16.msra.mxu3 %v1692_v46  ;;  %v2139_v8 = vld [vmem:[#allocation2 + $0x5c] sm:$0xf0]  ;;  %v1620_v10 = vor.u32 %v2143_v2, %v1617_v3  ;;  %v2140_v11 = vld [vmem:[#allocation2 + $0x64] sm:$0xf0]  ;;  %v2136_v12 = vld [vmem:[#allocation2 + $0x4c] sm:$0xf] }
  0x1e   :  { %497 = vmatpush.bf16.msra.mxu1 %v1684_v50  ;;  %v1593_v13 = vld [vmem:[#allocation2 + $0x68] sm:$0xf0]  ;;  %v2135_v14 = vld [vmem:[#allocation2 + $0x44] sm:$0xf]  ;;  %v1584_v16 = vor.u32 %v2139_v8, %v1583_v7  ;;  %v1551_v17 = vld [vmem:[#allocation2] sm:$0xf]  ;;  %v1592_v19 = vor.u32 %v2140_v11, %v1591_v9 }
  0x1f   :  { %v1585_v15 = vld [vmem:[#allocation2 + $0x60] sm:$0xf0]  ;;  %v2131_v18 = vld [vmem:[#allocation2 + $0x1c] sm:$0xf0]  ;;  %v1596_v20 = vor.u32 %v2136_v12, %v1593_v13  ;;  %v1559_v21 = vld [vmem:[#allocation2 + $0x8] sm:$0xf] }
  0x20   :  { %485 = vmatpush.bf16.msra.mxu0 %v1648_v56  ;;  %511 = vmatpush.bf16.msra.mxu2 %v1656_v57  ;;  %v2132_v22 = vld [vmem:[#allocation2 + $0x24] sm:$0xf0]  ;;  %v2128_v23 = vld [vmem:[#allocation2 + $0xc] sm:$0xf]  ;;  %v1588_v24 = vor.u32 %v2135_v14, %v1585_v15  ;;  %v1791_v26 = vld [vmem:[#allocation2 + $0x1d0] sm:$0xf]  ;;  %v1552_v31 = vor.u32 %v2131_v18, %v1551_v17 }
  0x21   :  { %524 = vmatpush.bf16.msra.mxu3 %v1660_v58  ;;  %v1561_v25 = vld [vmem:[#allocation2 + $0x28] sm:$0xf0]  ;;  %v2189_v27 = vld [vmem:[#allocation2 + $0x1ec] sm:$0xf0]  ;;  %v1799_v28 = vld [vmem:[#allocation2 + $0x1d8] sm:$0xf]  ;;  %v1560_v35 = vor.u32 %v2132_v22, %v1559_v21 }
  0x22   :  { %498 = vmatpush.bf16.msra.mxu1 %v1652_v62  ;;  %v2190_v29 = vld [vmem:[#allocation2 + $0x1f4] sm:$0xf0]  ;;  %v2186_v30 = vld [vmem:[#allocation2 + $0x1dc] sm:$0xf]  ;;  %v2127_v33 = vld [vmem:[#allocation2 + $0x4] sm:$0xf]  ;;  %v1564_v36 = vor.u32 %v2128_v23, %v1561_v25  ;;  %v1792_v39 = vor.u32 %v2189_v27, %v1791_v26 }
  0x23   :  { %v1801_v32 = vld [vmem:[#allocation2 + $0x1f8] sm:$0xf0]  ;;  %v1553_v34 = vld [vmem:[#allocation2 + $0x20] sm:$0xf0]  ;;  %v2185_v37 = vld [vmem:[#allocation2 + $0x1d4] sm:$0xf]  ;;  %v1800_v40 = vor.u32 %v2190_v29, %v1799_v28 }
  0x24   :  { %486 = vmatpush.bf16.msra.mxu0 %v1616_v4  ;;  %512 = vmatpush.bf16.msra.mxu2 %v1624_v5  ;;  %v1793_v38 = vld [vmem:[#allocation2 + $0x1f0] sm:$0xf0]  ;;  %v1759_v41 = vld [vmem:[#allocation2 + $0x190] sm:$0xf]  ;;  %v1804_v42 = vor.u32 %v2186_v30, %v1801_v32  ;;  %v1556_v43 = vor.u32 %v2127_v33, %v1553_v34  ;;  %v1767_v45 = vld [vmem:[#allocation2 + $0x198] sm:$0xf] }
  0x25   :  { %525 = vmatpush.bf16.msra.mxu3 %v1628_v6  ;;  %v2181_v44 = vld [vmem:[#allocation2 + $0x1ac] sm:$0xf0]  ;;  %v2182_v46 = vld [vmem:[#allocation2 + $0x1b4] sm:$0xf0]  ;;  %v1796_v47 = vor.u32 %v2185_v37, %v1793_v38  ;;  %v2178_v48 = vld [vmem:[#allocation2 + $0x19c] sm:$0xf] }
  0x26   :  { %499 = vmatpush.bf16.msra.mxu1 %v1620_v10  ;;  %v1769_v49 = vld [vmem:[#allocation2 + $0x1b8] sm:$0xf0]  ;;  %v2177_v50 = vld [vmem:[#allocation2 + $0x194] sm:$0xf]  ;;  %v2425_v52 = vld [vmem:[%s2513_s0] sm:$0xf]  ;;  %v1760_v53 = vor.u32 %v2181_v44, %v1759_v41  ;;  %v1768_v54 = vor.u32 %v2182_v46, %v1767_v45 }
  0x27   :  { %v1761_v51 = vld [vmem:[#allocation2 + $0x1b0] sm:$0xf0]  ;;  %v1727_v55 = vld [vmem:[#allocation2 + $0x150] sm:$0xf]  ;;  %v1772_v56 = vor.u32 %v2178_v48, %v1769_v49  ;;  %v1735_v58 = vld [vmem:[#allocation2 + $0x158] sm:$0xf] }
  0x28   :  { %487 = vmatpush.bf16.msra.mxu0 %v1584_v16  ;;  %513 = vmatpush.bf16.msra.mxu2 %v1592_v19  ;;  %v2173_v57 = vld [vmem:[#allocation2 + $0x16c] sm:$0xf0]  ;;  %v2174_v59 = vld [vmem:[#allocation2 + $0x174] sm:$0xf0]  ;;  %v1764_v60 = vor.u32 %v2177_v50, %v1761_v51  ;;  %v2170_v61 = vld [vmem:[#allocation2 + $0x15c] sm:$0xf] }
  0x29   :  { %526 = vmatpush.bf16.msra.mxu3 %v1596_v20  ;;  %v1737_v62 = vld [vmem:[#allocation2 + $0x178] sm:$0xf0]  ;;  %v2169_v63 = vld [vmem:[#allocation2 + $0x154] sm:$0xf]  ;;  %v1728_v1 = vor.u32 %v2173_v57, %v1727_v55  ;;  %v1736_v2 = vor.u32 %v2174_v59, %v1735_v58  ;;  %v1695_v3 = vld [vmem:[#allocation2 + $0x110] sm:$0xf] }
  0x2a   :  { %500 = vmatpush.bf16.msra.mxu1 %v1588_v24  ;;  %v1729_v0 = vld [vmem:[#allocation2 + $0x170] sm:$0xf0]  ;;  %v1740_v4 = vor.u32 %v2170_v61, %v1737_v62  ;;  %v2165_v5 = vld [vmem:[#allocation2 + $0x12c] sm:$0xf0]  ;;  %v1703_v6 = vld [vmem:[#allocation2 + $0x118] sm:$0xf] }
  0x2b   :  { %v2166_v7 = vld [vmem:[#allocation2 + $0x134] sm:$0xf0]  ;;  %v1732_v8 = vor.u32 %v2169_v63, %v1729_v0  ;;  %v2162_v9 = vld [vmem:[#allocation2 + $0x11c] sm:$0xf]  ;;  %v2161_v11 = vld [vmem:[#allocation2 + $0x114] sm:$0xf]  ;;  %v1696_v13 = vor.u32 %v2165_v5, %v1695_v3 }
  0x2c   :  { %488 = vmatpush.bf16.msra.mxu0 %v1552_v31  ;;  %514 = vmatpush.bf16.msra.mxu2 %v1560_v35  ;;  %v1705_v10 = vld [vmem:[#allocation2 + $0x138] sm:$0xf0]  ;;  %v1697_v12 = vld [vmem:[#allocation2 + $0x130] sm:$0xf0]  ;;  %v1704_v14 = vor.u32 %v2166_v7, %v1703_v6  ;;  %v1663_v15 = vld [vmem:[#allocation2 + $0xd0] sm:$0xf] }
  0x2d   :  { %527 = vmatpush.bf16.msra.mxu3 %v1564_v36  ;;  %v1708_v16 = vor.u32 %v2162_v9, %v1705_v10  ;;  %v2157_v17 = vld [vmem:[#allocation2 + $0xec] sm:$0xf0]  ;;  %v1671_v18 = vld [vmem:[#allocation2 + $0xd8] sm:$0xf]  ;;  %v1700_v20 = vor.u32 %v2161_v11, %v1697_v12  ;;  %v2154_v21 = vld [vmem:[#allocation2 + $0xdc] sm:$0xf] }
  0x2e   :  { %501 = vmatpush.bf16.msra.mxu1 %v1556_v43  ;;  %v2158_v19 = vld [vmem:[#allocation2 + $0xf4] sm:$0xf0]  ;;  %v1673_v22 = vld [vmem:[#allocation2 + $0xf8] sm:$0xf0]  ;;  %v2153_v23 = vld [vmem:[#allocation2 + $0xd4] sm:$0xf]  ;;  %v1664_v25 = vor.u32 %v2157_v17, %v1663_v15 }
  0x2f   :  { %515 = vmatmul.bf16.vlgmr.msra.gmra.mxu2 %v2425_v52  ;;  %489 = vmatmul.bf16.vlgmr.msra.gmra.mxu0 %v2425_v52  ;;  %v1665_v24 = vld [vmem:[#allocation2 + $0xf0] sm:$0xf0]  ;;  %v1672_v26 = vor.u32 %v2158_v19, %v1671_v18  ;;  %v1631_v27 = vld [vmem:[#allocation2 + $0x90] sm:$0xf]  ;;  %v1676_v29 = vor.u32 %v2154_v21, %v1673_v22  ;;  %v1639_v30 = vld [vmem:[#allocation2 + $0x98] sm:$0xf] }
  0x30   :  { %533 = vmatpush.bf16.msrb.mxu0 %v1792_v39  ;;  %559 = vmatpush.bf16.msrb.mxu2 %v1800_v40  ;;  %v2149_v28 = vld [vmem:[#allocation2 + $0xac] sm:$0xf0]  ;;  %v2150_v31 = vld [vmem:[#allocation2 + $0xb4] sm:$0xf0]  ;;  %v2146_v32 = vld [vmem:[#allocation2 + $0x9c] sm:$0xf]  ;;  %v1668_v33 = vor.u32 %v2153_v23, %v1665_v24 }
  0x31   :  { %572 = vmatpush.bf16.msrb.mxu3 %v1804_v42  ;;  %502 = vmatmul.bf16.vlgmr.msra.gmra.mxu1 %v2425_v52  ;;  %v1641_v34 = vld [vmem:[#allocation2 + $0xb8] sm:$0xf0]  ;;  %v2145_v35 = vld [vmem:[#allocation2 + $0x94] sm:$0xf]  ;;  %v1599_v37 = vld [vmem:[#allocation2 + $0x50] sm:$0xf]  ;;  %v1632_v38 = vor.u32 %v2149_v28, %v1631_v27  ;;  %v1640_v39 = vor.u32 %v2150_v31, %v1639_v30 }
  0x32   :  { %546 = vmatpush.bf16.msrb.mxu1 %v1796_v47  ;;  %528 = vmatmul.bf16.vlgmr.msra.gmra.mxu3 %v2425_v52  ;;  %v1633_v36 = vld [vmem:[#allocation2 + $0xb0] sm:$0xf0]  ;;  %v2141_v40 = vld [vmem:[#allocation2 + $0x6c] sm:$0xf0]  ;;  %v1607_v41 = vld [vmem:[#allocation2 + $0x58] sm:$0xf]  ;;  %v1644_v43 = vor.u32 %v2146_v32, %v1641_v34 }
  0x33   :  { %v2142_v42 = vld [vmem:[#allocation2 + $0x74] sm:$0xf0]  ;;  %v2138_v44 = vld [vmem:[#allocation2 + $0x5c] sm:$0xf]  ;;  %v1636_v45 = vor.u32 %v2145_v35, %v1633_v36  ;;  %v2137_v47 = vld [vmem:[#allocation2 + $0x54] sm:$0xf]  ;;  %v1600_v49 = vor.u32 %v2141_v40, %v1599_v37 }
  0x34   :  { %534 = vmatpush.bf16.msrb.mxu0 %v1760_v53  ;;  %560 = vmatpush.bf16.msrb.mxu2 %v1768_v54  ;;  %v1609_v46 = vld [vmem:[#allocation2 + $0x78] sm:$0xf0]  ;;  %v1601_v48 = vld [vmem:[#allocation2 + $0x70] sm:$0xf0]  ;;  %v1608_v50 = vor.u32 %v2142_v42, %v1607_v41  ;;  %v1567_v51 = vld [vmem:[#allocation2 + $0x10] sm:$0xf] }
  0x35   :  { %573 = vmatpush.bf16.msrb.mxu3 %v1772_v56  ;;  %v1612_v53 = vor.u32 %v2138_v44, %v1609_v46  ;;  %v2133_v54 = vld [vmem:[#allocation2 + $0x2c] sm:$0xf0]  ;;  %v1575_v55 = vld [vmem:[#allocation2 + $0x18] sm:$0xf]  ;;  %v1604_v57 = vor.u32 %v2137_v47, %v1601_v48  ;;  %v2130_v58 = vld [vmem:[#allocation2 + $0x1c] sm:$0xf] }
  0x36   :  { %547 = vmatpush.bf16.msrb.mxu1 %v1764_v60  ;;  %v2134_v56 = vld [vmem:[#allocation2 + $0x34] sm:$0xf0]  ;;  %v1577_v59 = vld [vmem:[#allocation2 + $0x38] sm:$0xf0]  ;;  %v2129_v60 = vld [vmem:[#allocation2 + $0x14] sm:$0xf]  ;;  %v1568_v62 = vor.u32 %v2133_v54, %v1567_v51 }
  0x37   :  { %v1569_v61 = vld [vmem:[#allocation2 + $0x30] sm:$0xf0]  ;;  %v1576_v63 = vor.u32 %v2134_v56, %v1575_v55  ;;  %v1580_v0 = vor.u32 %v2130_v58, %v1577_v59  ;;  %v2214_v3 = vld [vmem:[#allocation4 + $0xb8] sm:$0xff]  ;;  %v2196_v9 = vld [vmem:[#allocation4 + $0x28] sm:$0xff] }
  0x38   :  { %535 = vmatpush.bf16.msrb.mxu0 %v1728_v1  ;;  %561 = vmatpush.bf16.msrb.mxu2 %v1736_v2  ;;  %v2198_v1 = vld [vmem:[#allocation4 + $0x38] sm:$0xff]  ;;  %v1572_v2 = vor.u32 %v2129_v60, %v1569_v61  ;;  %v2197_v5 = vld [vmem:[#allocation4 + $0x30] sm:$0xff]  ;;  %v2212_v11 = vld [vmem:[#allocation4 + $0xa8] sm:$0xff] }
  0x39   :  { %574 = vmatpush.bf16.msrb.mxu3 %v1740_v4  ;;  %v2206_v4 = vld [vmem:[#allocation4 + $0x78] sm:$0xff]  ;;  %v2213_v7 = vld [vmem:[#allocation4 + $0xb0] sm:$0xff]  ;;  %v2204_v12 = vld [vmem:[#allocation4 + $0x68] sm:$0xff] }
  0x3a   :  { %548 = vmatpush.bf16.msrb.mxu1 %v1732_v8  ;;  %v2222_v6 = vld [vmem:[#allocation4 + $0xf8] sm:$0xff]  ;;  %v2205_v8 = vld [vmem:[#allocation4 + $0x70] sm:$0xff]  ;;  %v2211_v15 = vld [vmem:[#allocation4 + $0xa0] sm:$0xff] }
  0x3b   :  { %v2221_v10 = vld [vmem:[#allocation4 + $0xf0] sm:$0xff]  ;;  %v2194_v17 = vld [vmem:[#allocation4 + $0x18] sm:$0xff]  ;;  %v2192_v24 = vld [vmem:[#allocation4 + $0x8] sm:$0xff] }
  0x3c   :  { %536 = vmatpush.bf16.msrb.mxu0 %v1696_v13  ;;  %562 = vmatpush.bf16.msrb.mxu2 %v1704_v14  ;;  %v2195_v13 = vld [vmem:[#allocation4 + $0x20] sm:$0xff]  ;;  %v2220_v14 = vld [vmem:[#allocation4 + $0xe8] sm:$0xff]  ;;  %v2210_v18 = vld [vmem:[#allocation4 + $0x98] sm:$0xff] }
  0x3d   :  { %575 = vmatpush.bf16.msrb.mxu3 %v1708_v16  ;;  %v2203_v16 = vld [vmem:[#allocation4 + $0x60] sm:$0xff]  ;;  %v2202_v19 = vld [vmem:[#allocation4 + $0x58] sm:$0xff]  ;;  %v2209_v22 = vld [vmem:[#allocation4 + $0x90] sm:$0xff] }
  0x3e   :  { %549 = vmatpush.bf16.msrb.mxu1 %v1700_v20  ;;  %v2193_v20 = vld [vmem:[#allocation4 + $0x10] sm:$0xff]  ;;  %v2218_v21 = vld [vmem:[#allocation4 + $0xd8] sm:$0xff]  ;;  %v2200_v27 = vld [vmem:[#allocation4 + $0x48] sm:$0xff] }
  0x3f   :  { %v2201_v23 = vld [vmem:[#allocation4 + $0x50] sm:$0xff]  ;;  %v2191_v28 = vld [vmem:[#allocation4] sm:$0xff]  ;;  %v2216_v30 = vld [vmem:[#allocation4 + $0xc8] sm:$0xff] }
  0x40   :  { %537 = vmatpush.bf16.msrb.mxu0 %v1664_v25  ;;  %563 = vmatpush.bf16.msrb.mxu2 %v1672_v26  ;;  %v2217_v25 = vld [vmem:[#allocation4 + $0xd0] sm:$0xff]  ;;  %v2208_v26 = vld [vmem:[#allocation4 + $0x88] sm:$0xff]  ;;  %v2207_v31 = vld [vmem:[#allocation4 + $0x80] sm:$0xff] }
  0x41   :  { %576 = vmatpush.bf16.msrb.mxu3 %v1676_v29  ;;  %v2230_v29 = vld [vmem:[#allocation4 + $0x138] sm:$0xff]  ;;  %v2199_v32 = vld [vmem:[#allocation4 + $0x40] sm:$0xff]  ;;  %v2229_v35 = vld [vmem:[#allocation4 + $0x130] sm:$0xff] }
  0x42   :  { %550 = vmatpush.bf16.msrb.mxu1 %v1668_v33  ;;  %v2246_v33 = vld [vmem:[#allocation4 + $0x1b8] sm:$0xff]  ;;  %v2215_v36 = vld [vmem:[#allocation4 + $0xc0] sm:$0xff]  ;;  %v2236_v40 = vld [vmem:[#allocation4 + $0x168] sm:$0xff] }
  0x43   :  { %v2238_v34 = vld [vmem:[#allocation4 + $0x178] sm:$0xff]  ;;  %v2245_v41 = vld [vmem:[#allocation4 + $0x1b0] sm:$0xff]  ;;  %v2235_v44 = vld [vmem:[#allocation4 + $0x160] sm:$0xff] }
  0x44   :  { %538 = vmatpush.bf16.msrb.mxu0 %v1632_v38  ;;  %564 = vmatpush.bf16.msrb.mxu2 %v1640_v39  ;;  %v2254_v37 = vld [vmem:[#allocation4 + $0x1f8] sm:$0xff]  ;;  %v2237_v38 = vld [vmem:[#allocation4 + $0x170] sm:$0xff]  ;;  %v2228_v39 = vld [vmem:[#allocation4 + $0x128] sm:$0xff] }
  0x45   :  { %577 = vmatpush.bf16.msrb.mxu3 %v1644_v43  ;;  %v2253_v42 = vld [vmem:[#allocation4 + $0x1f0] sm:$0xff]  ;;  %v2227_v43 = vld [vmem:[#allocation4 + $0x120] sm:$0xff]  ;;  %v2252_v46 = vld [vmem:[#allocation4 + $0x1e8] sm:$0xff] }
  0x46   :  { %551 = vmatpush.bf16.msrb.mxu1 %v1636_v45  ;;  %v2244_v45 = vld [vmem:[#allocation4 + $0x1a8] sm:$0xff]  ;;  %v2226_v47 = vld [vmem:[#allocation4 + $0x118] sm:$0xff]  ;;  %v2225_v51 = vld [vmem:[#allocation4 + $0x110] sm:$0xff] }
  0x47   :  { %v2234_v48 = vld [vmem:[#allocation4 + $0x158] sm:$0xff]  ;;  %v2224_v56 = vld [vmem:[#allocation4 + $0x108] sm:$0xff]  ;;  %v2241_v58 = vld [vmem:[#allocation4 + $0x190] sm:$0xff] }
  0x48   :  { %539 = vmatpush.bf16.msrb.mxu0 %v1600_v49  ;;  %565 = vmatpush.bf16.msrb.mxu2 %v1608_v50  ;;  %v2243_v49 = vld [vmem:[#allocation4 + $0x1a0] sm:$0xff]  ;;  %v2242_v54 = vld [vmem:[#allocation4 + $0x198] sm:$0xff]  ;;  %v2249_v59 = vld [vmem:[#allocation4 + $0x1d0] sm:$0xff] }
  0x49   :  { %578 = vmatpush.bf16.msrb.mxu3 %v1612_v53  ;;  %v2251_v50 = vld [vmem:[#allocation4 + $0x1e0] sm:$0xff]  ;;  %v2233_v53 = vld [vmem:[#allocation4 + $0x150] sm:$0xff]  ;;  %v2250_v55 = vld [vmem:[#allocation4 + $0x1d8] sm:$0xff] }
  0x4a   :  { %552 = vmatpush.bf16.msrb.mxu1 %v1604_v57  ;;  %v2232_v57 = vld [vmem:[#allocation4 + $0x148] sm:$0xff]  ;;  %v143_v60 = vld [vmem:[%s2515_s2] sm:$0xff] }
  0x4b   :  { %v145_v61 = vperm.slane %v143_v60, 0 }
  0x4c   :  { %540 = vmatpush.bf16.msrb.mxu0 %v1568_v62  ;;  %566 = vmatpush.bf16.msrb.mxu2 %v1576_v63  ;;  %v2223_v62 = vld [vmem:[#allocation4 + $0x100] sm:$0xff]  ;;  %v146_v63 = vperm.slane %v143_v60, 1 }
  0x4d   :  { %579 = vmatpush.bf16.msrb.mxu3 %v1580_v0  ;;  %v2231_v0 = vld [vmem:[#allocation4 + $0x140] sm:$0xff] }
  0x4e   :  { %553 = vmatpush.bf16.msrb.mxu1 %v1572_v2  ;;  %v2248_v2 = vld [vmem:[#allocation4 + $0x1c8] sm:$0xff] }
  0x4f   :  { %541 = vmatmul.bf16.vlgmr.msrb.gmra.mxu0 %v2425_v52  ;;  %567 = vmatmul.bf16.vlgmr.msrb.gmra.mxu2 %v2425_v52 }
  0x50   :  { %1109 = vmatpush.bf16.msra.mxu0 %v2198_v1  ;;  %1135 = vmatpush.bf16.msra.mxu2 %v2214_v3  ;;  %v2240_v1 = vld [vmem:[#allocation4 + $0x188] sm:$0xff] }
  0x51   :  { %580 = vmatmul.bf16.vlgmr.msrb.gmra.mxu3 %v2425_v52  ;;  %554 = vmatmul.bf16.vlgmr.msrb.gmra.mxu1 %v2425_v52  ;;  %v2219_v52 = vld [vmem:[#allocation4 + $0xe0] sm:$0xff] }
  0x52   :  { %1122 = vmatpush.bf16.msra.mxu1 %v2206_v4  ;;  %1148 = vmatpush.bf16.msra.mxu3 %v2222_v6 }
  0x54   :  { %1110 = vmatpush.bf16.msra.mxu0 %v2197_v5  ;;  %1136 = vmatpush.bf16.msra.mxu2 %v2213_v7  ;;  %v147_v5 = vperm.slane %v143_v60, 2 }
  0x56   :  { %1123 = vmatpush.bf16.msra.mxu1 %v2205_v8  ;;  %1149 = vmatpush.bf16.msra.mxu3 %v2221_v10  ;;  %v148_v8 = vperm.slane %v143_v60, 3  ;;  %v2239_v10 = vld [vmem:[#allocation4 + $0x180] sm:$0xff] }
  0x58   :  { %1111 = vmatpush.bf16.msra.mxu0 %v2196_v9  ;;  %1137 = vmatpush.bf16.msra.mxu2 %v2212_v11  ;;  %v2247_v11 = vld [vmem:[#allocation4 + $0x1c0] sm:$0xff] }
  0x5a   :  { %1124 = vmatpush.bf16.msra.mxu1 %v2204_v12  ;;  %1150 = vmatpush.bf16.msra.mxu3 %v2220_v14 }
  0x5c   :  { %1112 = vmatpush.bf16.msra.mxu0 %v2195_v13  ;;  %1138 = vmatpush.bf16.msra.mxu2 %v2211_v15 }
  0x5e   :  { %1125 = vmatpush.bf16.msra.mxu1 %v2203_v16  ;;  %1151 = vmatpush.bf16.msra.mxu3 %v2219_v52 }
  0x60   :  { %1113 = vmatpush.bf16.msra.mxu0 %v2194_v17  ;;  %1139 = vmatpush.bf16.msra.mxu2 %v2210_v18 }
  0x62   :  { %1126 = vmatpush.bf16.msra.mxu1 %v2202_v19  ;;  %1152 = vmatpush.bf16.msra.mxu3 %v2218_v21 }
  0x64   :  { %1114 = vmatpush.bf16.msra.mxu0 %v2193_v20  ;;  %1140 = vmatpush.bf16.msra.mxu2 %v2209_v22  ;;  %v149_v22 = vperm.slane %v143_v60, 4 }
  0x66   :  { %1127 = vmatpush.bf16.msra.mxu1 %v2201_v23  ;;  %1153 = vmatpush.bf16.msra.mxu3 %v2217_v25  ;;  %v150_v23 = vperm.slane %v143_v60, 5 }
  0x68   :  { %1115 = vmatpush.bf16.msra.mxu0 %v2192_v24  ;;  %1141 = vmatpush.bf16.msra.mxu2 %v2208_v26 }
  0x6a   :  { %1128 = vmatpush.bf16.msra.mxu1 %v2200_v27  ;;  %1154 = vmatpush.bf16.msra.mxu3 %v2216_v30  ;;  %v152_v30 = vperm.slane %v143_v60, 7 }
  0x6c   :  { %1116 = vmatpush.bf16.msra.mxu0 %v2191_v28  ;;  %1142 = vmatpush.bf16.msra.mxu2 %v2207_v31 }
  0x6e   :  { %1129 = vmatpush.bf16.msra.mxu1 %v2199_v32  ;;  %1155 = vmatpush.bf16.msra.mxu3 %v2215_v36 }
  0x70   :  { %1161 = vmatpush.bf16.msrb.mxu0 %v2230_v29  ;;  %1187 = vmatpush.bf16.msrb.mxu2 %v2246_v33  ;;  %v151_v29 = vperm.slane %v143_v60, 6 }
  0x72   :  { %1174 = vmatpush.bf16.msrb.mxu1 %v2238_v34  ;;  %1200 = vmatpush.bf16.msrb.mxu3 %v2254_v37 }
  0x74   :  { %1162 = vmatpush.bf16.msrb.mxu0 %v2229_v35  ;;  %1188 = vmatpush.bf16.msrb.mxu2 %v2245_v41 }
  0x76   :  { %1175 = vmatpush.bf16.msrb.mxu1 %v2237_v38  ;;  %1201 = vmatpush.bf16.msrb.mxu3 %v2253_v42 }
  0x78   :  { %1163 = vmatpush.bf16.msrb.mxu0 %v2228_v39  ;;  %1189 = vmatpush.bf16.msrb.mxu2 %v2244_v45 }
  0x7a   :  { %1176 = vmatpush.bf16.msrb.mxu1 %v2236_v40  ;;  %1202 = vmatpush.bf16.msrb.mxu3 %v2252_v46 }
  0x7c   :  { %1164 = vmatpush.bf16.msrb.mxu0 %v2227_v43  ;;  %1190 = vmatpush.bf16.msrb.mxu2 %v2243_v49 }
  0x7e   :  { %1177 = vmatpush.bf16.msrb.mxu1 %v2235_v44  ;;  %1203 = vmatpush.bf16.msrb.mxu3 %v2251_v50 }
  0x80   :  { %1165 = vmatpush.bf16.msrb.mxu0 %v2226_v47  ;;  %1191 = vmatpush.bf16.msrb.mxu2 %v2242_v54 }
  0x82   :  { %1178 = vmatpush.bf16.msrb.mxu1 %v2234_v48  ;;  %1204 = vmatpush.bf16.msrb.mxu3 %v2250_v55  ;;  %v2278_v48 = vld [vmem:[%s2517_s4] ss:$0 sm:$0xff] }
  0x84   :  { %1166 = vmatpush.bf16.msrb.mxu0 %v2225_v51  ;;  %1192 = vmatpush.bf16.msrb.mxu2 %v2241_v58  ;;  %v73_v58 = vlaneseq }
  0x86   :  { %1179 = vmatpush.bf16.msrb.mxu1 %v2233_v53  ;;  %1205 = vmatpush.bf16.msrb.mxu3 %v2249_v59  ;;  %v74_v60 = vshrl.u32 %v73_v58, 7  ;;  %v2255_v58 = vld [vmem:[%s2520_s7] sm:$0xff] }
  0x88   :  { %1167 = vmatpush.bf16.msrb.mxu0 %v2224_v56  ;;  %1193 = vmatpush.bf16.msrb.mxu2 %v2240_v1  ;;  %vm75_vm0 = vcmp.lt.s32.totalorder %v74_v60, 2 }
  0x8a   :  { %1180 = vmatpush.bf16.msrb.mxu1 %v2232_v57  ;;  %1206 = vmatpush.bf16.msrb.mxu3 %v2248_v2 }
  0x8c   :  { %1168 = vmatpush.bf16.msrb.mxu0 %v2223_v62  ;;  %1194 = vmatpush.bf16.msrb.mxu2 %v2239_v10 }
  0x8e   :  { %1181 = vmatpush.bf16.msrb.mxu1 %v2231_v0  ;;  %1207 = vmatpush.bf16.msrb.mxu3 %v2247_v11 }
  0xac   :  { %v490_v3 = vpop.f32.mrf.mxu0 }
  0xad   :  { %v491_v4 = vadd.f32 %v490_v3, %v145_v61  ;;  %v2350_v3 = vmov 0.0  }
  0xae   :  { %v503_v6 = vpop.f32.mrf.mxu1 }
  0xaf   :  { %v585_v7 = vpack.c.bf16 %v491_v4, %v491_v4  ;;  %v504_v9 = vadd.f32 %v503_v6, %v146_v63  ;;  %v2441_v4 = vsel %vm75_vm0, 1.0, %v2350_v3 }
  0xb1   :  { %v586_v13 = vpack.c.bf16 %v504_v9, %v504_v9  ;;  %1117 = vmatmul.bf16.vlgmr.msra.gmra.mxu0 %v585_v7 }
  0xb2   :  { %v516_v12 = vpop.f32.mrf.mxu2 }
  0xb3   :  { %v517_v14 = vadd.f32 %v516_v12, %v147_v5  ;;  %1130 = vmatmul.bf16.vlgmr.msra.gmra.mxu1 %v586_v13 }
  0xb4   :  { %v492_v52 = vpop.f32.mrf.mxu0 }
  0xb5   :  { %v529_v15 = vpop.f32.mrf.mxu3  ;;  %v587_v17 = vpack.c.bf16 %v517_v14, %v517_v14 }
  0xb6   :  { %v530_v16 = vadd.f32 %v529_v15, %v148_v8  ;;  %v505_v19 = vpop.f32.mrf.mxu1 }
  0xb7   :  { %1143 = vmatmul.bf16.vlgmr.msra.gmra.mxu2 %v587_v17 }
  0xb8   :  { %v588_v18 = vpack.c.bf16 %v530_v16, %v530_v16 }
  0xba   :  { %1156 = vmatmul.bf16.vlgmr.msra.gmra.mxu3 %v588_v18  ;;  %v518_v20 = vpop.f32.mrf.mxu2 }
  0xbd   :  { %v531_v21 = vpop.f32.mrf.mxu3 }
  0xcc   :  { %v542_v24 = vpop.f32.mrf.mxu0 }
  0xcd   :  { %v543_v25 = vadd.f32 %v542_v24, %v149_v22 }
  0xce   :  { %v555_v26 = vpop.f32.mrf.mxu1 }
  0xcf   :  { %v589_v27 = vpack.c.bf16 %v543_v25, %v543_v25  ;;  %v556_v28 = vadd.f32 %v555_v26, %v150_v23 }
  0xd1   :  { %v590_v31 = vpack.c.bf16 %v556_v28, %v556_v28  ;;  %1169 = vmatmul.bf16.vlgmr.msrb.gmra.mxu0 %v589_v27 }
  0xd2   :  { %v568_v32 = vpop.f32.mrf.mxu2 }
  0xd3   :  { %v569_v33 = vadd.f32 %v568_v32, %v151_v29  ;;  %1182 = vmatmul.bf16.vlgmr.msrb.gmra.mxu1 %v590_v31  ;;  %v2262_v31 = vld [vmem:[%s2520_s7 + $0x38] sm:$0xff] }
  0xd4   :  { %v581_v34 = vpop.f32.mrf.mxu3  ;;  %v544_v36 = vpop.f32.mrf.mxu0  ;;  %1366 = vmatpush.bf16.msra.mxu0 %v2262_v31 }
  0xd5   :  { %v582_v35 = vadd.f32 %v581_v34, %v152_v30  ;;  %v591_v37 = vpack.c.bf16 %v569_v33, %v569_v33  ;;  %v2279_v33 = vld [vmem:[%s2518_s5] ss:$0 sm:$0xff] }
  0xd6   :  { %v557_v39 = vpop.f32.mrf.mxu1 }
  0xd7   :  { %v592_v38 = vpack.c.bf16 %v582_v35, %v582_v35  ;;  %1195 = vmatmul.bf16.vlgmr.msrb.gmra.mxu2 %v591_v37  ;;  %v2261_v35 = vld [vmem:[%s2520_s7 + $0x30] sm:$0xff]  ;;  %v2280_v37 = vld [vmem:[%s2519_s6] ss:$0 sm:$0xff] }
  0xd8   :  { %1367 = vmatpush.bf16.msra.mxu0 %v2261_v35 }
  0xd9   :  { %1208 = vmatmul.bf16.vlgmr.msrb.gmra.mxu3 %v592_v38  ;;  %v2260_v38 = vld [vmem:[%s2520_s7 + $0x28] sm:$0xff] }
  0xda   :  { %v570_v40 = vpop.f32.mrf.mxu2 }
  0xdc   :  { %v583_v41 = vpop.f32.mrf.mxu3  ;;  %1368 = vmatpush.bf16.msra.mxu0 %v2260_v38 }
  0xdd   :  { %v2259_v41 = vld [vmem:[%s2520_s7 + $0x20] sm:$0xff] }
  0xe0   :  { %1369 = vmatpush.bf16.msra.mxu0 %v2259_v41 }
 0x12e   :  { %v1118_v42 = vpop.f32.mrf.mxu0 }
 0x12f   :  { %v1119_v49 = vadd.f32 %v2278_v48, %v1118_v42  ;;  %v2257_v48 = vld [vmem:[%s2520_s7 + $0x10] sm:$0xff] }
 0x130   :  { %v1131_v43 = vpop.f32.mrf.mxu1 }
 0x131   :  { %v1132_v53 = vadd.f32 %v1131_v43, %v1119_v49 }
 0x136   :  { %v1120_v44 = vpop.f32.mrf.mxu0 }
 0x137   :  { %v2258_v44 = vld [vmem:[%s2520_s7 + $0x18] sm:$0xff] }
 0x138   :  { %v1133_v45 = vpop.f32.mrf.mxu1  ;;  %1370 = vmatpush.bf16.msra.mxu0 %v2258_v44 }
 0x13a   :  { %v1144_v46 = vpop.f32.mrf.mxu2 }
 0x13b   :  { %v1145_v54 = vadd.f32 %v1144_v46, %v1132_v53 }
 0x13c   :  { %1371 = vmatpush.bf16.msra.mxu0 %v2257_v48 }
 0x13d   :  { %v1157_v47 = vpop.f32.mrf.mxu3 }
 0x13e   :  { %v1158_v57 = vadd.f32 %v1157_v47, %v1145_v54  ;;  %v2256_v54 = vld [vmem:[%s2520_s7 + $0x8] sm:$0xff] }
 0x140   :  { %1372 = vmatpush.bf16.msra.mxu0 %v2256_v54 }
 0x142   :  { %v1146_v50 = vpop.f32.mrf.mxu2 }
 0x144   :  { %1373 = vmatpush.bf16.msra.mxu0 %v2255_v58  ;;  %v2268_v58 = vld [vmem:[%s2524_s11 + $0x28] sm:$0xff] }
 0x145   :  { %v1159_v51 = vpop.f32.mrf.mxu3 }
 0x14e   :  { %v1170_v55 = vpop.f32.mrf.mxu0 }
 0x14f   :  { %v1171_v59 = vadd.f32 %v1170_v55, %v1158_v57 }
 0x150   :  { %v1183_v56 = vpop.f32.mrf.mxu1 }
 0x151   :  { %v1184_v63 = vadd.f32 %v1183_v56, %v1171_v59 }
 0x156   :  { %v1172_v61 = vpop.f32.mrf.mxu0 }
 0x158   :  { %v1185_v62 = vpop.f32.mrf.mxu1 }
 0x15a   :  { %v1196_v0 = vpop.f32.mrf.mxu2 }
 0x15b   :  { %v1197_v1 = vadd.f32 %v1196_v0, %v1184_v63 }
 0x15c   :  { %v1209_v2 = vpop.f32.mrf.mxu3 }
 0x15d   :  { %v1210_v5 = vadd.f32 %v1209_v2, %v1197_v1 }
 0x15f   :  { %v1215_v6 = vmul.f32 %v2441_v4, %v1210_v5 }
 0x161   :  { %v1216_v7 = vrot.slane %v1215_v6, 4 }
 0x162   :  { %v1198_v8 = vpop.f32.mrf.mxu2 }
 0x163   :  { %v1217_v9 = vadd.f32 %v1216_v7, %v1215_v6 }
 0x164   :  { %v1211_v10 = vpop.f32.mrf.mxu3 }
 0x165   :  { %v1218_v11 = vrot.slane %v1217_v9, 2 }
 0x167   :  { %v1219_v12 = vadd.f32 %v1218_v11, %v1217_v9 }
 0x169   :  { %v1220_v13 = vrot.slane %v1219_v12, 1 }
 0x16b   :  { %v1221_v14 = vadd.f32 %v1220_v13, %v1219_v12 }
 0x16d   :  { %v1222_v15 = vmul.f32 0.5, %v1221_v14 }
 0x16f   :  { %v1223_v16 = vsub.f32 %v1210_v5, %v1222_v15 }
 0x171   :  { %v1224_v17 = vmul.f32 %v2441_v4, %v1223_v16 }
 0x173   :  { %v1225_v52 = vmul.f32 %v1224_v17, %v1224_v17 }
 0x175   :  { %v1226_v18 = vrot.slane %v1225_v52, 4 }
 0x177   :  { %v1227_v19 = vadd.f32 %v1226_v18, %v1225_v52 }
 0x179   :  { %v1228_v20 = vrot.slane %v1227_v19, 2 }
 0x17b   :  { %v1229_v21 = vadd.f32 %v1228_v20, %v1227_v19 }
 0x17d   :  { %v1230_v22 = vrot.slane %v1229_v21, 1 }
 0x17f   :  { %v1231_v23 = vadd.f32 %v1230_v22, %v1229_v21 }
 0x181   :  { %v1232_v24 = vmul.f32 0.5, %v1231_v23  ;;  %v2281_v23 = vld [vmem:[%s2521_s8] ss:$0 sm:$0xff] }
 0x183   :  { %v1233_v25 = vadd.f32 1e-05, %v1232_v24 }
 0x185   :  { %2284 = vrsqrt.f32 %v1233_v25  ;;  %vm1240_vm2 = vweird.f32 %v1233_v25 }
 0x18b   :  { %v2285_v26 = vpop.eup %2284 }
 0x18c   :  { %v1235_v27 = vmul.f32 %v2285_v26, %v1233_v25  ;;  %vm1241_vm1 = vweird.f32 %v2285_v26 }
 0x18d   :  { %vm1242_vm3 = vmor %vm1240_vm2, %vm1241_vm1 }
 0x18e   :  { %v1236_v28 = vmul.f32 %v2285_v26, %v1235_v27 }
 0x190   :  { %v1237_v29 = vmul.f32 0.5, %v1236_v28 }
 0x192   :  { %v1238_v30 = vsub.f32 1.5, %v1237_v29 }
 0x194   :  { %v1239_v32 = vmul.f32 %v2285_v26, %v1238_v30 }
 0x196   :  { %v1243_v34 = vsel %vm1242_vm3, %v2285_v26, %v1239_v32 }
 0x197   :  { %v1244_v36 = vmul.f32 %v1243_v34, %v1223_v16 }
 0x199   :  { %v1248_v39 = vmul.f32 %v2279_v33, %v1244_v36 }
 0x19b   :  { %v1252_v40 = vadd.f32 %v2280_v37, %v1248_v39 }
 0x19d   :  { %v1254_v42 = vmul.f32 0.70710677, %v1252_v40  ;;  %v1253_v19 = vmul.f32 0.5, %v1252_v40 }
 0x19f   :  { %v1255_v43 = vmul.f32 %v1254_v42, %v1254_v42 }
 0x1a1   :  { %v1256_v45 = vmin.f32 %v1255_v43, 16.0 }
 0x1a3   :  { %v1257_v46 = vmul.f32 2.1237322e-06, %v1256_v45  ;;  %v1268_v47 = vmul.f32 3.8918573e-05, %v1256_v45 }
 0x1a5   :  { %v1258_v49 = vadd.f32 0.00028619796, %v1257_v46  ;;  %v1269_v50 = vadd.f32 0.001143296, %v1268_v47 }
 0x1a7   :  { %v1259_v51 = vmul.f32 %v1258_v49, %v1256_v45  ;;  %v1270_v53 = vmul.f32 %v1269_v50, %v1256_v45 }
 0x1a9   :  { %v1271_v55 = vadd.f32 0.014752088, %v1270_v53  ;;  %v1260_v56 = vadd.f32 0.0036580483, %v1259_v51  ;;  %v2282_v53 = vld [vmem:[%s2522_s9] ss:$0 sm:$0xff] }
 0x1ab   :  { %v1272_v57 = vmul.f32 %v1271_v55, %v1256_v45  ;;  %v1261_v60 = vmul.f32 %v1260_v56, %v1256_v45  ;;  %v2269_v55 = vld [vmem:[%s2524_s11 + $0x30] sm:$0xff] }
 0x1ad   :  { %v1273_v59 = vadd.f32 0.112945676, %v1272_v57  ;;  %v1262_v63 = vadd.f32 0.05243302, %v1261_v60  ;;  %v2283_v57 = vld [vmem:[%s2523_s10] ss:$0 sm:$0xff] }
 0x1af   :  { %v1274_v61 = vmul.f32 %v1273_v59, %v1256_v45  ;;  %v1263_v2 = vmul.f32 %v1262_v63, %v1256_v45 }
 0x1b1   :  { %v1275_v62 = vadd.f32 0.4994258, %v1274_v61  ;;  %v1264_v3 = vadd.f32 0.18741608, %v1263_v2  ;;  %v2267_v61 = vld [vmem:[%s2524_s11 + $0x20] sm:$0xff] }
 0x1b3   :  { %v1276_v0 = vmul.f32 %v1275_v62, %v1256_v45  ;;  %v1265_v6 = vmul.f32 %v1264_v3, %v1256_v45 }
 0x1b5   :  { %v1277_v1 = vadd.f32 1.0, %v1276_v0  ;;  %v1266_v10 = vadd.f32 1.1283791, %v1265_v6  ;;  %v2266_v0 = vld [vmem:[%s2524_s11 + $0x18] sm:$0xff] }
 0x1b7   :  { %2286 = vrcp.f32 %v1277_v1  ;;  %v1289_v9 = vand.u32 2147483648, %v1277_v1  ;;  %v1287_v12 = vand.u32 2147483647, %v1277_v1  ;;  %vm1283_vm5 = vweird.f32 %v1277_v1 }
 0x1b8   :  { %v1267_v15 = vmul.f32 %v1266_v10, %v1254_v42  ;;  %v2264_v10 = vld [vmem:[%s2524_s11 + $0x8] sm:$0xff] }
 0x1b9   :  { %v1290_v14 = vor.u32 1.1754944e-38, %v1289_v9  ;;  %vm1288_vm7 = vcmp.eq.f32.partialorder %v1287_v12, 8.507059e+37 }
 0x1bd   :  { %v2287_v5 = vpop.eup %2286 }
 0x1be   :  { %v1279_v7 = vmul.f32 %v2287_v5, %v1277_v1  ;;  %vm1284_vm4 = vweird.f32 %v2287_v5 }
 0x1bf   :  { %vm1285_vm6 = vmor %vm1283_vm5, %vm1284_vm4 }
 0x1c0   :  { %v1280_v8 = vsub.f32 1.0, %v1279_v7 }
 0x1c2   :  { %v1281_v11 = vmul.f32 %v2287_v5, %v1280_v8 }
 0x1c4   :  { %v1282_v13 = vadd.f32 %v2287_v5, %v1281_v11 }
 0x1c6   :  { %v1286_v16 = vsel %vm1285_vm6, %v2287_v5, %v1282_v13  ;;  %v2265_v5 = vld [vmem:[%s2524_s11 + $0x10] sm:$0xff] }
 0x1c7   :  { %v1291_v17 = vsel %vm1288_vm7, %v1290_v14, %v1286_v16  ;;  %v2263_v14 = vld [vmem:[%s2524_s11] sm:$0xff] }
 0x1c8   :  { %v1292_v52 = vmul.f32 %v1291_v17, %v1267_v15 }
 0x1ca   :  { %v2061_v18 = vclamps-f32 %v1292_v52, 1.0 }
 0x1cc   :  { %v1295_v20 = vadd.f32 1.0, %v2061_v18 }
 0x1ce   :  { %v1296_v21 = vmul.f32 %v1295_v20, %v1253_v19 }
 0x1d0   :  { %v1297_v22 = vpack.c.bf16 %v1296_v21, %v1296_v21 }
 0x1d2   :  { %1374 = vmatmul.bf16.vlgmr.msra.gmra.mxu0 %v1297_v22 }
 0x24f   :  { %v1375_v24 = vpop.f32.mrf.mxu0 }
 0x250   :  { %v1376_v25 = vadd.f32 %v2281_v23, %v1375_v24 }
 0x252   :  { %v1381_v26 = vmul.f32 %v2441_v4, %v1376_v25 }
 0x254   :  { %v1382_v27 = vrot.slane %v1381_v26, 4 }
 0x256   :  { %v1383_v28 = vadd.f32 %v1382_v27, %v1381_v26 }
 0x257   :  { %v1377_v29 = vpop.f32.mrf.mxu0 }
 0x258   :  { %v1384_v30 = vrot.slane %v1383_v28, 2 }
 0x25a   :  { %v1385_v31 = vadd.f32 %v1384_v30, %v1383_v28 }
 0x25c   :  { %v1386_v32 = vrot.slane %v1385_v31, 1 }
 0x25e   :  { %v1387_v33 = vadd.f32 %v1386_v32, %v1385_v31 }
 0x260   :  { %v1388_v34 = vmul.f32 0.5, %v1387_v33 }
 0x262   :  { %v1389_v35 = vsub.f32 %v1376_v25, %v1388_v34 }
 0x264   :  { %v1390_v36 = vmul.f32 %v2441_v4, %v1389_v35  ;;  %v2270_v4 = vld [vmem:[%s2524_s11 + $0x38] sm:$0xff] }
 0x265   :  { %1528 = vmatpush.bf16.msra.mxu1 %v2270_v4 }
 0x266   :  { %v1391_v37 = vmul.f32 %v1390_v36, %v1390_v36 }
 0x268   :  { %v1392_v38 = vrot.slane %v1391_v37, 4 }
 0x269   :  { %1529 = vmatpush.bf16.msra.mxu1 %v2269_v55 }
 0x26a   :  { %v1393_v39 = vadd.f32 %v1392_v38, %v1391_v37 }
 0x26c   :  { %v1394_v40 = vrot.slane %v1393_v39, 2 }
 0x26d   :  { %1530 = vmatpush.bf16.msra.mxu1 %v2268_v58 }
 0x26e   :  { %v1395_v41 = vadd.f32 %v1394_v40, %v1393_v39 }
 0x270   :  { %v1396_v42 = vrot.slane %v1395_v41, 1 }
 0x271   :  { %1531 = vmatpush.bf16.msra.mxu1 %v2267_v61 }
 0x272   :  { %v1397_v43 = vadd.f32 %v1396_v42, %v1395_v41 }
 0x274   :  { %v1398_v44 = vmul.f32 0.5, %v1397_v43 }
 0x275   :  { %1532 = vmatpush.bf16.msra.mxu1 %v2266_v0 }
 0x276   :  { %v1399_v45 = vadd.f32 1e-05, %v1398_v44 }
 0x278   :  { %2288 = vrsqrt.f32 %v1399_v45  ;;  %vm1406_vm9 = vweird.f32 %v1399_v45 }
 0x279   :  { %1533 = vmatpush.bf16.msra.mxu1 %v2265_v5 }
 0x27d   :  { %1534 = vmatpush.bf16.msra.mxu1 %v2264_v10 }
 0x27e   :  { %v2289_v46 = vpop.eup %2288 }
 0x27f   :  { %v1401_v47 = vmul.f32 %v2289_v46, %v1399_v45  ;;  %vm1407_vm8 = vweird.f32 %v2289_v46 }
 0x280   :  { %vm1408_vm10 = vmor %vm1406_vm9, %vm1407_vm8 }
 0x281   :  { %v1402_v48 = vmul.f32 %v2289_v46, %v1401_v47  ;;  %1535 = vmatpush.bf16.msra.mxu1 %v2263_v14 }
 0x283   :  { %v1403_v49 = vmul.f32 0.5, %v1402_v48 }
 0x285   :  { %v1404_v50 = vsub.f32 1.5, %v1403_v49 }
 0x287   :  { %v1405_v51 = vmul.f32 %v2289_v46, %v1404_v50 }
 0x289   :  { %v1409_v54 = vsel %vm1408_vm10, %v2289_v46, %v1405_v51 }
 0x28a   :  { %v1410_v56 = vmul.f32 %v1409_v54, %v1389_v35 }
 0x28c   :  { %v1414_v59 = vmul.f32 %v2282_v53, %v1410_v56 }
 0x28e   :  { %v1418_v60 = vadd.f32 %v2283_v57, %v1414_v59 }
 0x290   :  { %v1420_v62 = vmul.f32 0.70710677, %v1418_v60  ;;  %v1419_v38 = vmul.f32 0.5, %v1418_v60 }
 0x292   :  { %v1421_v63 = vmul.f32 %v1420_v62, %v1420_v62 }
 0x294   :  { %v1422_v1 = vmin.f32 %v1421_v63, 16.0 }
 0x296   :  { %v1423_v2 = vmul.f32 2.1237322e-06, %v1422_v1  ;;  %v1434_v3 = vmul.f32 3.8918573e-05, %v1422_v1 }
 0x298   :  { %v1424_v6 = vadd.f32 0.00028619796, %v1423_v2  ;;  %v1435_v7 = vadd.f32 0.001143296, %v1434_v3 }
 0x29a   :  { %v1425_v8 = vmul.f32 %v1424_v6, %v1422_v1  ;;  %v1436_v9 = vmul.f32 %v1435_v7, %v1422_v1 }
 0x29c   :  { %v1437_v11 = vadd.f32 0.014752088, %v1436_v9  ;;  %v1426_v12 = vadd.f32 0.0036580483, %v1425_v8 }
 0x29e   :  { %v1438_v13 = vmul.f32 %v1437_v11, %v1422_v1  ;;  %v1427_v16 = vmul.f32 %v1426_v12, %v1422_v1 }
 0x2a0   :  { %v1439_v15 = vadd.f32 0.112945676, %v1438_v13  ;;  %v1428_v18 = vadd.f32 0.05243302, %v1427_v16 }
 0x2a2   :  { %v1440_v17 = vmul.f32 %v1439_v15, %v1422_v1  ;;  %v1429_v21 = vmul.f32 %v1428_v18, %v1422_v1 }
 0x2a4   :  { %v1441_v52 = vadd.f32 0.4994258, %v1440_v17  ;;  %v1430_v22 = vadd.f32 0.18741608, %v1429_v21 }
 0x2a6   :  { %v1442_v19 = vmul.f32 %v1441_v52, %v1422_v1  ;;  %v1431_v24 = vmul.f32 %v1430_v22, %v1422_v1 }
 0x2a8   :  { %v1443_v20 = vadd.f32 1.0, %v1442_v19  ;;  %v1432_v28 = vadd.f32 1.1283791, %v1431_v24 }
 0x2aa   :  { %2290 = vrcp.f32 %v1443_v20  ;;  %v1455_v27 = vand.u32 2147483648, %v1443_v20  ;;  %v1453_v30 = vand.u32 2147483647, %v1443_v20  ;;  %vm1449_vm12 = vweird.f32 %v1443_v20 }
 0x2ab   :  { %v1433_v33 = vmul.f32 %v1432_v28, %v1420_v62 }
 0x2ac   :  { %v1456_v32 = vor.u32 1.1754944e-38, %v1455_v27  ;;  %vm1454_vm14 = vcmp.eq.f32.partialorder %v1453_v30, 8.507059e+37 }
 0x2b0   :  { %v2291_v23 = vpop.eup %2290 }
 0x2b1   :  { %v1445_v25 = vmul.f32 %v2291_v23, %v1443_v20  ;;  %vm1450_vm11 = vweird.f32 %v2291_v23 }
 0x2b2   :  { %vm1451_vm13 = vmor %vm1449_vm12, %vm1450_vm11 }
 0x2b3   :  { %v1446_v26 = vsub.f32 1.0, %v1445_v25 }
 0x2b5   :  { %v1447_v29 = vmul.f32 %v2291_v23, %v1446_v26 }
 0x2b7   :  { %v1448_v31 = vadd.f32 %v2291_v23, %v1447_v29 }
 0x2b9   :  { %v1452_v34 = vsel %vm1451_vm13, %v2291_v23, %v1448_v31 }
 0x2ba   :  { %v1457_v35 = vsel %vm1454_vm14, %v1456_v32, %v1452_v34 }
 0x2bb   :  { %v1458_v36 = vmul.f32 %v1457_v35, %v1433_v33 }
 0x2bd   :  { %v2094_v37 = vclamps-f32 %v1458_v36, 1.0 }
 0x2bf   :  { %v1461_v39 = vadd.f32 1.0, %v2094_v37 }
 0x2c1   :  { %v1462_v40 = vmul.f32 %v1461_v39, %v1419_v38 }
 0x2c3   :  { %v1463_v41 = vpack.c.bf16 %v1462_v40, %v1462_v40 }
 0x2c5   :  { %1536 = vmatmul.bf16.vlgmr.msra.gmra.mxu1 %v1463_v41 }
 0x342   :  { %v1537_v42 = vpop.f32.mrf.mxu1 }
 0x343   :  { %1541 = vst [vmem:[%s2525_s12] sm:$0xff] %v1537_v42 }
 0x34a   :  { %v1539_v43 = vpop.f32.mrf.mxu1 }
 0x34b   :  { %1546 = vsyncpa [#allocation3], 1 }
 0x34c   :  { %1547 = vsyncpa [#allocation5], 1 }

</bundles_post_ra>
